<compile_context>
chip_gen: v7x
topology: tpu7x:2x2x1
jax: 0.10.0
libtpu: 0.0.40
codegen_flags: <defaults>
</compile_context>

<pallas_src>
import math

import jax
import jax.numpy as jnp
from jax import lax
from jax.experimental import pallas as pl
from jax.experimental.pallas import tpu as pltpu


def _round_up(x, m):
    return (x + m - 1) // m * m


# ------------------------------ Pallas kernel ------------------------------ #
def _encoder_pooler_kernel(ids_ref, emb_hbm, mask_ref, w_ref, b_ref,
                           o_ref, hbuf, sems):
    """Fused gather(emb, ids) * mask -> bf16 MXU matmul -> + bias, per M tile.

    ids_ref : (M_pad,)       int32  SMEM (scalar prefetch)
    emb_hbm : (V, Dw)        f32    HBM (manual DMA row gather)
    mask_ref: (tm, 1)        f32    VMEM
    w_ref   : (Di_pad, Dw)   bf16   VMEM, resident across grid steps
    b_ref   : (1, Di_pad)    f32    VMEM, resident across grid steps
    o_ref   : (tm, Di_pad)   f32    VMEM out (lane-dense: Di_pad % 128 == 0)
    hbuf    : (tm, Dw)       f32    VMEM scratch (gathered embedding rows)
    sems    : (tm,)          DMA semaphores
    """
    tm = mask_ref.shape[0]
    base = pl.program_id(0) * tm

    # Issue one row-gather DMA per token of this tile.
    @pl.loop(0, tm)
    def _start(r):
        row = ids_ref[base + r]
        pltpu.make_async_copy(emb_hbm.at[row], hbuf.at[r], sems.at[r]).start()

    @pl.loop(0, tm)
    def _wait(r):
        pltpu.make_async_copy(emb_hbm.at[0], hbuf.at[r], sems.at[r]).wait()

    # Mask multiply in f32 (VPU), matmul in bf16 on the MXU with f32
    # accumulation, bias add once per output tile in f32.
    h = hbuf[...] * mask_ref[...]                                  # (tm, Dw) f32
    acc = lax.dot_general(
        h.astype(jnp.bfloat16), w_ref[...],
        dimension_numbers=(((1,), (1,)), ((), ())),                # contract Dw with Dw
        preferred_element_type=jnp.float32)                        # (tm, Di_pad) f32
    o_ref[...] = (acc + b_ref[...]).astype(o_ref.dtype)


# ------------------------------ host wrapper ------------------------------- #
def text_encoder_forward(text, emb_table, pooler_weight, pooler_bias):
    """text: int32 [B, 2*L]. Returns float32 [B, L, item_dim]."""
    B, num_words2 = text.shape
    L = num_words2 // 2
    text_ids = text[:, :L]                    # torch.narrow(text, 1, 0, L)
    text_attmask = text[:, L:2 * L]           # torch.narrow(text, 1, L, L)

    V, Dw = emb_table.shape
    Di = pooler_weight.shape[0]
    M = B * L

    m_pad = _round_up(M, 8)
    di_pad = _round_up(max(Di, 128), 128)     # lane-dense output slab

    # Tile the M axis; marked "parallel" below so v7x shards it across both TCs.
    if m_pad % 256 == 0:
        tm = 256
    elif m_pad % 128 == 0:
        tm = 128
    else:
        tm = 8
    grid_m = m_pad // tm

    ids_flat = jnp.pad(text_ids.reshape(M).astype(jnp.int32), (0, m_pad - M))
    mask2d = jnp.pad(text_attmask.reshape(M, 1).astype(jnp.float32),
                     ((0, m_pad - M), (0, 0)))

    # Weight kept in its (Di, Dw) layout (no wrapper transpose); zero-padded to
    # a 128-multiple item dim and cast to bf16 for the MXU. Bias stays f32.
    w_pad = jnp.zeros((di_pad, Dw), jnp.bfloat16).at[:Di].set(
        pooler_weight.astype(jnp.bfloat16))
    b_pad = jnp.zeros((1, di_pad), jnp.float32).at[0, :Di].set(
        pooler_bias.astype(jnp.float32))

    out = pl.pallas_call(
        _encoder_pooler_kernel,
        out_shape=jax.ShapeDtypeStruct((m_pad, di_pad), jnp.float32),
        grid_spec=pltpu.PrefetchScalarGridSpec(
            num_scalar_prefetch=1,                                  # ids -> SMEM
            grid=(grid_m,),
            in_specs=[
                pl.BlockSpec(memory_space=pl.ANY),                  # emb table (HBM)
                pl.BlockSpec((tm, 1), lambda m, ids: (m, 0)),       # mask tile
                pl.BlockSpec((di_pad, Dw), lambda m, ids: (0, 0)),  # weight (resident)
                pl.BlockSpec((1, di_pad), lambda m, ids: (0, 0)),   # bias   (resident)
            ],
            out_specs=pl.BlockSpec((tm, di_pad), lambda m, ids: (m, 0)),
            scratch_shapes=[
                pltpu.VMEM((tm, Dw), jnp.float32),                  # gathered rows
                pltpu.SemaphoreType.DMA((tm,)),                     # per-row sems
            ]),
        compiler_params=pltpu.CompilerParams(
            dimension_semantics=("parallel",),
            vmem_limit_bytes=32 * 1024 * 1024),
    )(ids_flat, emb_table, mask2d, w_pad, b_pad)

    return out[:M, :Di].reshape(B, L, Di)


# ------------------------- TextEncoder (JAX version) ----------------------- #
class TextEncoderJAX:
    def __init__(self, key, vocab_size, item_embedding_dim, word_embedding_dim):
        k_emb, k_w = jax.random.split(key, 2)

        # TODO(synk): the real `bert_model` (full BERT encoder) is an external
        # module with no clean single-kernel Pallas equivalent; a deterministic
        # embedding-lookup + attention-mask zeroing stand-in is used instead,
        # and that stand-in IS fused into the Pallas kernel (DMA row gather).
        self.bert_embedding = (
            jax.random.normal(k_emb, (vocab_size, word_embedding_dim), jnp.float32) * 0.02
        )

        # nn.Linear(word_embedding_dim, item_embedding_dim): xavier_normal_
        # weight, zero bias — as in the PyTorch module.
        xavier_std = math.sqrt(2.0 / (word_embedding_dim + item_embedding_dim))
        self.pooler_weight = (
            jax.random.normal(k_w, (item_embedding_dim, word_embedding_dim), jnp.float32)
            * xavier_std
        )
        self.pooler_bias = jnp.zeros((item_embedding_dim,), jnp.float32)

    def __call__(self, text):
        return text_encoder_forward(
            text, self.bert_embedding, self.pooler_weight, self.pooler_bias)


# ---------------------------------- main ----------------------------------- #
if __name__ == "__main__":
    key = jax.random.PRNGKey(0)
    k_model, k_ids = jax.random.split(key)

    batch = 2
    num_words = 8
    vocab_size = 64
    word_embedding_dim = 32
    item_embedding_dim = 16

    encoder = TextEncoderJAX(k_model, vocab_size, item_embedding_dim, word_embedding_dim)

    # text = concat([ids, attention_mask], axis=1) -> [B, 2*L] int32
    ids = jax.random.randint(k_ids, (batch, num_words), 0, vocab_size, dtype=jnp.int32)
    mask = jnp.concatenate(
        [jnp.ones((batch, num_words - 2), jnp.int32),
         jnp.zeros((batch, 2), jnp.int32)], axis=1)               # some masked positions
    text = jnp.concatenate([ids, mask], axis=1)

    out = encoder(text)
    out = jax.block_until_ready(out)

    # Correctness check against a plain-JAX reference (f32; kernel uses a bf16
    # MXU matmul with f32 accumulation, so tolerance is loosened accordingly).
    hidden_ref = jnp.take(encoder.bert_embedding, ids, axis=0) * mask[..., None].astype(jnp.float32)
    ref = jnp.einsum("bld,ed->ble", hidden_ref, encoder.pooler_weight) + encoder.pooler_bias

    assert out.shape == (batch, num_words, item_embedding_dim)
    assert jnp.allclose(out, ref, atol=1e-2, rtol=1e-2)

    print("KERNEL_OK")
</pallas_src>

<mosaic_0001>
module attributes {stable_mosaic.version = 11 : i64} {
  func.func @_encoder_pooler_kernel(%arg0: i32, %arg1: memref<16xi32, #tpu.memory_space<smem>>, %arg2: memref<64x32xf32, #tpu.memory_space<any>>, %arg3: memref<8x1xf32, #tpu.memory_space<vmem>>, %arg4: memref<128x32xbf16, #tpu.memory_space<vmem>>, %arg5: memref<1x128xf32, #tpu.memory_space<vmem>>, %arg6: memref<8x128xf32, #tpu.memory_space<vmem>>, %arg7: memref<8x32xf32, #tpu.memory_space<vmem>>, %arg8: memref<8x!tpu.dma_semaphore, #tpu.memory_space<semaphore_mem>>) attributes {dimension_semantics = [#tpu.dimension_semantics<parallel>], iteration_bounds = array<i64: 2>, scalar_prefetch = 1 : i64, scratch_operands = 2 : i64, tpu.core_type = #tpu.core_type<tc>, window_params = [{}, {transform_indices = @transform_1, window_bounds = array<i64: 8, 1>}, {pipeline_mode = #tpu.pipeline_mode<synchronous>, transform_indices = @transform_2, window_bounds = array<i64: 128, 32>}, {pipeline_mode = #tpu.pipeline_mode<synchronous>, transform_indices = @transform_3, window_bounds = array<i64: 1, 128>}, {transform_indices = @transform_4, window_bounds = array<i64: 8, 128>}]} {
    %c8_i32 = arith.constant 8 : i32
    %0 = arith.muli %arg0, %c8_i32 : i32
    %c0_i32 = arith.constant 0 : i32
    %c8_i32_0 = arith.constant 8 : i32
    %1 = arith.addi %c0_i32, %c8_i32_0 : i32
    %c1_i32 = arith.constant 1 : i32
    scf.for %arg9 = %c0_i32 to %1 step %c1_i32  : i32 {
      %c1_i32_15 = arith.constant 1 : i32
      %14 = arith.muli %arg9, %c1_i32_15 : i32
      %c0_i32_16 = arith.constant 0 : i32
      %15 = arith.addi %c0_i32_16, %14 : i32
      %16 = arith.addi %0, %15 : i32
      %17 = arith.index_cast %16 : i32 to index
      %18 = memref.load %arg1[%17] : memref<16xi32, #tpu.memory_space<smem>>
      %c0_i32_17 = arith.constant 0 : i32
      %19 = tpu.memref_slice %arg2[%18, %c0_i32_17] : memref<64x32xf32, #tpu.memory_space<any>> -> memref<1x32xf32, #tpu.memory_space<any>>
      %20 = tpu.memref_squeeze %19 : memref<1x32xf32, #tpu.memory_space<any>> -> memref<32xf32, #tpu.memory_space<any>>
      %c0_i32_18 = arith.constant 0 : i32
      %21 = tpu.memref_slice %arg7[%15, %c0_i32_18] : memref<8x32xf32, #tpu.memory_space<vmem>> -> memref<1x32xf32, #tpu.memory_space<vmem>>
      %22 = tpu.memref_squeeze %21 : memref<1x32xf32, #tpu.memory_space<vmem>> -> memref<32xf32, #tpu.memory_space<vmem>>
      %23 = tpu.memref_slice %arg8[%15] : memref<8x!tpu.dma_semaphore, #tpu.memory_space<semaphore_mem>> -> memref<1x!tpu.dma_semaphore, #tpu.memory_space<semaphore_mem>>
      %24 = tpu.memref_squeeze %23 : memref<1x!tpu.dma_semaphore, #tpu.memory_space<semaphore_mem>> -> memref<!tpu.dma_semaphore, #tpu.memory_space<semaphore_mem>>
      tpu.enqueue_dma source(%20 : memref<32xf32, #tpu.memory_space<any>>) target(%22 : memref<32xf32, #tpu.memory_space<vmem>>) target_semaphore(%24 : memref<!tpu.dma_semaphore, #tpu.memory_space<semaphore_mem>>)
    }
    %c8_i32_1 = arith.constant 8 : i32
    %c0_i32_2 = arith.constant 0 : i32
    %c8_i32_3 = arith.constant 8 : i32
    %2 = arith.addi %c0_i32_2, %c8_i32_3 : i32
    %c1_i32_4 = arith.constant 1 : i32
    scf.for %arg9 = %c0_i32_2 to %2 step %c1_i32_4  : i32 {
      %c1_i32_15 = arith.constant 1 : i32
      %14 = arith.muli %arg9, %c1_i32_15 : i32
      %c0_i32_16 = arith.constant 0 : i32
      %15 = arith.addi %c0_i32_16, %14 : i32
      %c0_i32_17 = arith.constant 0 : i32
      %c0_i32_18 = arith.constant 0 : i32
      %16 = tpu.memref_slice %arg2[%c0_i32_17, %c0_i32_18] : memref<64x32xf32, #tpu.memory_space<any>> -> memref<1x32xf32, #tpu.memory_space<any>>
      %17 = tpu.memref_squeeze %16 : memref<1x32xf32, #tpu.memory_space<any>> -> memref<32xf32, #tpu.memory_space<any>>
      %c0_i32_19 = arith.constant 0 : i32
      %18 = tpu.memref_slice %arg7[%15, %c0_i32_19] : memref<8x32xf32, #tpu.memory_space<vmem>> -> memref<1x32xf32, #tpu.memory_space<vmem>>
      %19 = tpu.memref_squeeze %18 : memref<1x32xf32, #tpu.memory_space<vmem>> -> memref<32xf32, #tpu.memory_space<vmem>>
      %20 = tpu.memref_slice %arg8[%15] : memref<8x!tpu.dma_semaphore, #tpu.memory_space<semaphore_mem>> -> memref<1x!tpu.dma_semaphore, #tpu.memory_space<semaphore_mem>>
      %21 = tpu.memref_squeeze %20 : memref<1x!tpu.dma_semaphore, #tpu.memory_space<semaphore_mem>> -> memref<!tpu.dma_semaphore, #tpu.memory_space<semaphore_mem>>
      tpu.wait_dma2 semaphore(%21 : memref<!tpu.dma_semaphore, #tpu.memory_space<semaphore_mem>>) src(%17 : memref<32xf32, #tpu.memory_space<any>>) dst(%19 : memref<32xf32, #tpu.memory_space<vmem>>)
    }
    %c8_i32_5 = arith.constant 8 : i32
    %c0 = arith.constant 0 : index
    %c0_6 = arith.constant 0 : index
    %3 = vector.load %arg7[%c0, %c0_6] : memref<8x32xf32, #tpu.memory_space<vmem>>, vector<8x32xf32>
    %c0_7 = arith.constant 0 : index
    %c0_8 = arith.constant 0 : index
    %4 = vector.load %arg3[%c0_7, %c0_8] : memref<8x1xf32, #tpu.memory_space<vmem>>, vector<8x1xf32>
    %5 = vector.broadcast %4 : vector<8x1xf32> to vector<8x32xf32>
    %6 = arith.mulf %3, %5 : vector<8x32xf32>
    %7 = arith.truncf %6 : vector<8x32xf32> to vector<8x32xbf16>
    %c0_9 = arith.constant 0 : index
    %c0_10 = arith.constant 0 : index
    %8 = vector.load %arg4[%c0_9, %c0_10] : memref<128x32xbf16, #tpu.memory_space<vmem>>, vector<128x32xbf16>
    %cst = arith.constant dense<0.000000e+00> : vector<8x128xf32>
    %9 = tpu.matmul %7, %8, %cst {dimension_numbers = #tpu.dot_dimension_numbers<[1], [1], [0], [0], [0, 0, 1, 0], [], []>} : vector<8x32xbf16>, vector<128x32xbf16>, vector<8x128xf32> -> vector<8x128xf32>
    %c0_11 = arith.constant 0 : index
    %c0_12 = arith.constant 0 : index
    %10 = vector.load %arg5[%c0_11, %c0_12] : memref<1x128xf32, #tpu.memory_space<vmem>>, vector<1x128xf32>
    %11 = vector.broadcast %10 : vector<1x128xf32> to vector<8x128xf32>
    %12 = arith.addf %9, %11 : vector<8x128xf32>
    %c0_13 = arith.constant 0 : index
    %c0_14 = arith.constant 0 : index
    %13 = vector.load %arg6[%c0_13, %c0_14] : memref<8x128xf32, #tpu.memory_space<vmem>>, vector<8x128xf32>
    tpu.vector_store %arg6[%c0_13, %c0_14], %12 {strides = array<i32>} : memref<8x128xf32, #tpu.memory_space<vmem>>, vector<8x128xf32>,
    return
  }
  func.func @transform_1(%arg0: i32, %arg1: memref<16xi32, #tpu.memory_space<smem>>) -> (i32, i32) {
    %c0_i32 = arith.constant 0 : i32
    %c0_i32_0 = arith.constant 0 : i32
    return %arg0, %c0_i32 : i32, i32
  }
  func.func @transform_2(%arg0: i32, %arg1: memref<16xi32, #tpu.memory_space<smem>>) -> (i32, i32) {
    %c0_i32 = arith.constant 0 : i32
    %c0_i32_0 = arith.constant 0 : i32
    %c0_i32_1 = arith.constant 0 : i32
    return %c0_i32, %c0_i32_0 : i32, i32
  }
  func.func @transform_3(%arg0: i32, %arg1: memref<16xi32, #tpu.memory_space<smem>>) -> (i32, i32) {
    %c0_i32 = arith.constant 0 : i32
    %c0_i32_0 = arith.constant 0 : i32
    %c0_i32_1 = arith.constant 0 : i32
    return %c0_i32, %c0_i32_0 : i32, i32
  }
  func.func @transform_4(%arg0: i32, %arg1: memref<16xi32, #tpu.memory_space<smem>>) -> (i32, i32) {
    %c0_i32 = arith.constant 0 : i32
    %c0_i32_0 = arith.constant 0 : i32
    return %arg0, %c0_i32 : i32, i32
  }
}

</mosaic_0001>

<bundles_post_ra>
// kernel: tpu_custom_call.1
= control target key start
LH: loop header
LB: loop body
LE: loop exit
PB: predicated region body
PF: predicated region fallthrough
CT: control target
= control target key end

     0   :  { %s944_s0 = inlined_call_operand.vmem [shape: s32[16], index: 0, kind: input, shape index: {}]   ;;  %s945_s1 = inlined_call_operand.vmem [shape: f32[64,32], index: 1, kind: input, shape index: {}]   ;;  %s946_s2 = inlined_call_operand.vmem [shape: f32[16,1], index: 2, kind: input, shape index: {}]   ;;  %s947_s3 = inlined_call_operand.vmem [shape: bf16[128,32], index: 3, kind: input, shape index: {}]   ;;  %s948_s4 = inlined_call_operand.vmem [shape: f32[1,128], index: 4, kind: input, shape index: {}]   ;;  %s949_s5 = inlined_call_operand.hbm [shape: f32[16,128], index: 5, kind: output, shape index: {}]  }
   0x1   :  { %s10_s20 = sshll.u32 %s944_s0, 4  ;;  %s11_s20 = int_to_ptr.vmem [resolvable:$true] %s10_s20 }
   0x2   :  { %s659_s21 = scalar_lea.vmem %s11_s20, 16  ;;  %p664_p1 = scmp.lt.s32.totalorder %s11_s20, %s11_s20 }
   0x3   :  { %p660_p0 = scmp.ne.s32.totalorder %s11_s20, %s659_s21  ;;  %p665_p2 = scmp.lt.s32.totalorder %s659_s21, %s659_s21 }
   0x5   :  { %p666_p3 = por %p665_p2, %p664_p1 }
   0x7   :  { %p667_p4 = pnand %p666_p3, %p660_p0 }
   0x9   :  { %670 = shalt.err (!%p667_p4)  }
   0xa   :  { %s755_s22 = smov [#allocation5]  }
   0xb   :  { %13 = dma.vmem_to_smem %s11_s20, 16, %s755_s22, [#allocation4] }
   0xc   :  { %723 = dma.done.wait [#allocation4], 16 }
   0xd   :  { %724 = vsyncadd [#allocation4], 4294967280 }
   0xe   :  { %15 = sfence }
   0xf   :  { %16 = vsyncpa [#allocation7], 0 }
  0x10   :  { %18 = vsyncpa [#allocation7 + $0x1], 0  ;;  %s793_s23 = smov 0   ;;  %s795_s24 = smov 0  }
  0x11   :  { %s797_s0 = smov 0   ;;  %s799_s25 = smov 0  }
  0x12 LB: > { %s814_s26 = sadd.s32 4294967295, %s745_s25   ;;  %s533_s27 = sadd.s32 4294967294, %s745_s25   ;;  %s745_s25 = sphi %s799_s25, %s955_s25   ;;  %s741_s0 = sphi %s797_s0, %s954_s0   ;;  %s737_s24 = sphi %s795_s24, %s953_s24   ;;  %s733_s23 = sphi %s793_s23, %s952_s23  }
  0x13   : > { %s818_s28 = sadd.s32 1, %s745_s25   ;;  %s99_s29 = sadd.s32 1, %s741_s0 }
  0x14   : > { %s96_s30 = ssub.s32 %s745_s25, %s818_s28  ;;  %p109_p5 = scmp.ne.s32.totalorder %s741_s0, %s737_s24 }
  0x15   : > { %p97_p6 = scmp.eq.s32.totalorder %s96_s30, 0  ;;  %p110_p7 = scmp.eq.s32.totalorder %s814_s26, 1 }
  0x16   : > { %p115_p8 = scmp.ne.s32.totalorder %s737_s24, %s733_s23  ;;  %p116_p9 = scmp.eq.s32.totalorder %s533_s27, 1 }
  0x17   : > { %s829_s6 = scalar_select %p97_p6, %s741_s0, %s99_s29  }
  0x18   : > { %p831_p10 = por %p110_p7, %p109_p5  ;;  %p835_p11 = por %p116_p9, %p115_p8 }
  0x19   : > { %p536_p12 = scmp.ge.s32.totalorder %s745_s25, 1  ;;  %p147_p13 = scmp.lt.s32.totalorder %s745_s25, 3 }
  0x1b   : > { %p148_p0 = pnand %p536_p12, %p147_p13 }
  0x1c   : > { %s167_s9 = sand.u32 (!%p148_p0), 1, %s737_s24   ;;  %p170_p1 = scmp.lt.s32.totalorder (!%p148_p0), %s814_s26, 1 }
  0x1d   : > { %151 = sbr.rel (%p148_p0) target bundleno = 426 (0x1aa), region = 32  ;;  %s845_s10 = sshll.u32 (!%p148_p0), %s167_s9, 3 }
  0x1e   : > { %s539_s11 = sshll.u32 (!%p148_p0), %s814_s26, 3  ;;  %s169_s17 = scalar_lea.vmem (!%p148_p0), [#allocation6], %s845_s10 }
  0x1f   : > { %s747_s18 = smov (!%p148_p0), 0  }
  0x24   : > { %s171_s12 = scalar_select %p170_p1, %s814_s26, 1 }
  0x26   : > { %s538_s13 = sshll.u32 %s171_s12, 3 }
  0x27   : > { %s173_s16 = scalar_lea.vmem %s946_s2, %s538_s13 }
  0x28 LB: >> { %s182_s19 = sadd.s32 %s749_s18, %s539_s11  ;;  %s185_s29 = scalar_lea.vmem [#allocation2], %s749_s18  ;;  %s749_s18 = sphi %s747_s18, %s181_s18  }
  0x29   : >> { %s183_s20 = sld [smem:[#allocation5 + %s182_s19]]  ;;  %s186_s30 = scalar_lea.sflag [#allocation3], %s749_s18 }
  0x2f   : >> { %s184_s27 = scalar_lea.vmem %s945_s1, %s183_s20 }
  0x30   : >> { %v204_v0 = vld [vmem:[%s184_s27] sm:$0x1] }
  0x31   : >> { %205 = vst [vmem:[%s185_s29] sm:$0x1] %v204_v0 }
  0x32   : >> { %230 = vsyncadd %s186_s30, 16  ;;  %s181_s18 = sadd.s32 1, %s749_s18  }
  0x33   : >> { %p178_p2 = scmp.ge.s32.totalorder %s181_s18, 8  }
  0x34   : > { %s751_s12 = smov (%p178_p2), 0  }
  0x35   : > { %180 = sbr.rel (!%p178_p2) target bundleno = 40 (0x28), region = 132 }
  0x3c LB: >> { %s237_s13 = scalar_lea.sflag [#allocation3], %s753_s12  ;;  %s753_s12 = sphi %s751_s12, %s236_s12  }
  0x3d   : >> { %725 = dma.done.wait %s237_s13, 16 }
  0x3e   : >> { %726 = vsyncadd %s237_s13, 4294967280  ;;  %s236_s12 = sadd.s32 1, %s753_s12  }
  0x3f   : >> { %p233_p3 = scmp.ge.s32.totalorder %s236_s12, 8  }
  0x40   : > { %v241_v1 = vld [vmem:[%s173_s16] sm:$0xff] (%p233_p3)  ;;  %v756_v3 = vmov (%p233_p3), 0   ;;  %v757_v4 = vmov (%p233_p3), 0.0   ;;  %vm312_vm0 = vcmask (%p233_p3), 261120   ;;  %v652_v6 = vld [vmem:[%s947_s3 + $0x8] sm:$0xff] (%p233_p3)   ;;  %vm758_vm1 = vmmov (%p233_p3), 0  }
  0x41   : > { %235 = sbr.rel (!%p233_p3) target bundleno = 60 (0x3c), region = 143  ;;  %v651_v2 = vld [vmem:[%s947_s3] sm:$0xff] (%p233_p3)   ;;  %650 = vset.pattern.permute.xlu0 (%p233_p3), %v756_v3  ;;  %571 = vmatprep.subr.bf16.mxu0 (%p233_p3), %v757_v4  ;;  %v320_v7 = vsel (%p233_p3), %vm312_vm0, %v652_v6, 0  ;;  %v653_v8 = vld [vmem:[%s947_s3 + $0x10] sm:$0xff] (%p233_p3)   ;;  %v654_v10 = vld [vmem:[%s947_s3 + $0x18] sm:$0xff] (%p233_p3)   ;;  %s551_s16 = sshll.u32 (%p233_p3), %s814_s26, 7 }
  0x42   : > { %244 = vperm.xlu0 (%p233_p3), %650, %v241_v1   ;;  %v317_v5 = vsel (%p233_p3), %vm312_vm0, %v651_v2, 0  ;;  %587 = vmatprep.mubr.msk.bf16.mxu0 (%p233_p3), %vm758_vm1, %v757_v4  ;;  %v323_v9 = vsel (%p233_p3), %vm312_vm0, %v653_v8, 0  ;;  %v326_v11 = vsel (%p233_p3), %vm312_vm0, %v654_v10, 0  ;;  %v655_v12 = vld [vmem:[%s947_s3 + $0x20] sm:$0xff] (%p233_p3)   ;;  %v656_v14 = vld [vmem:[%s947_s3 + $0x28] sm:$0xff] (%p233_p3)   ;;  %v657_v16 = vld [vmem:[%s947_s3 + $0x30] sm:$0xff] (%p233_p3)   ;;  %s898_s22 = scalar_lea.hbm (%p233_p3), %s949_s5, %s551_s16 }
  0x43   : > { %572 = vmatpush3.bf16.xpose.msra.mxu0 (%p233_p3), %v317_v5  ;;  %v329_v13 = vsel (%p233_p3), %vm312_vm0, %v655_v12, 0  ;;  %v332_v15 = vsel (%p233_p3), %vm312_vm0, %v656_v14, 0  ;;  %v335_v17 = vsel (%p233_p3), %vm312_vm0, %v657_v16, 0  ;;  %v658_v18 = vld [vmem:[%s947_s3 + $0x38] sm:$0xff] (%p233_p3)   ;;  %v240_v20 = vld [vmem:[#allocation2] sm:$0xff] (%p233_p3)  ;;  %s395_s19 = sshll.u32 (%p233_p3), %s169_s17, 4  ;;  %s900_s19 = int_to_ptr.vmem [resolvable:$true] %s395_s19 }
  0x44   : > { %573 = vmatprep.subr.bf16.mxu0 (%p233_p3), %v757_v4  ;;  %v338_v19 = vsel (%p233_p3), %vm312_vm0, %v658_v18, 0  ;;  %v540_v24 = vld [vmem:[%s948_s4] ss:$0 sm:$0xff] (%p233_p3)  ;;  %s382_s26 = scalar_lea.sflag (%p233_p3), [#allocation7], %s167_s9  ;;  %s671_s27 = scalar_lea.vmem (%p233_p3), %s900_s19, 128 }
  0x45   : > { %p672_p4 = scmp.ne.s32.totalorder (%p233_p3), %s900_s19, %s671_s27  ;;  %s759_s29 = smov (%p233_p3), [#allocation6]  }
  0x46   : > { %s675_s30 = sshll.u32 (%p233_p3), %s759_s29, 4  ;;  %s676_s30 = int_to_ptr.vmem [resolvable:$false] %s675_s30 }
  0x47   : > { %p673_p5 = pnand (%p233_p3), %p672_p4, %p831_p10  ;;  %s677_s12 = scalar_lea.vmem (%p233_p3), %s676_s30, 256 }
  0x48   : > { %p678_p7 = scmp.lt.s32.totalorder %s900_s19, %s676_s30  ;;  %p679_p8 = scmp.lt.s32.totalorder %s677_s12, %s671_s27 }
  0x49   : > { %p674_p6 = pneg %p673_p5 }
  0x4a   : > { %p680_p9 = por %p679_p8, %p678_p7 }
  0x4b   : > { %574 = vmatpush3.bf16.xpose.msra.mxu0 %v320_v7 }
  0x4c   : > { %575 = vmatprep.subr.bf16.mxu0 %v757_v4  ;;  %p681_p12 = pnand %p680_p9, %p674_p6 }
  0x53   : > { %576 = vmatpush3.bf16.xpose.msra.mxu0 %v323_v9 }
  0x54   : > { %577 = vmatprep.subr.bf16.mxu0 %v757_v4 }
  0x5b   : > { %578 = vmatpush3.bf16.xpose.msra.mxu0 %v326_v11 }
  0x5c   : > { %579 = vmatprep.subr.bf16.mxu0 %v757_v4 }
  0x63   : > { %580 = vmatpush3.bf16.xpose.msra.mxu0 %v329_v13 }
  0x64   : > { %581 = vmatprep.subr.bf16.mxu0 %v757_v4 }
  0x6b   : > { %582 = vmatpush3.bf16.xpose.msra.mxu0 %v332_v15 }
  0x6c   : > { %583 = vmatprep.subr.bf16.mxu0 %v757_v4 }
  0x73   : > { %584 = vmatpush3.bf16.xpose.msra.mxu0 %v335_v17 }
  0x74   : > { %585 = vmatprep.subr.bf16.mxu0 %v757_v4 }
  0x7b   : > { %586 = vmatpush3.bf16.xpose.msra.mxu0 %v338_v19 }
  0xc1   : > { %v245_v21 = vpop.permute.xlu0 %244 }
  0xc2   : > { %v247_v22 = vmul.f32 %v245_v21, %v240_v20 }
  0xc4   : > { %v248_v23 = vpack.c.bf16 %v247_v22, %v247_v22 }
  0xc6   : > { %588 = vmatmul.mubr.msk.bf16.vlgmr.msra.gmra.mrb[0].mxu0 %vm312_vm0, %v248_v23 }
 0x199   : > { %v374_v25 = vpop.f32.mrb[0].mxu0 }
 0x19a   : > { %v375_v26 = vadd.f32 %v540_v24, %v374_v25  ;;  %v589_v27 = vpop.f32.mrb[1].mxu0 }
 0x19b   : > { %v377_v28 = vpop.f32.mrb[2].mxu0 }
 0x19c   : > { %380 = vst [vmem:[%s169_s17] sm:$0xff] %v375_v26  ;;  %v590_v29 = vpop.f32.mrb[3].mxu0 }
 0x19d   : > { %684 = shalt.err (!%p681_p12)
}
 0x19e   : > { %s685_s9 = scalar_lea.hbm %s898_s22, 128  ;;  %s689_s13 = scalar_lea.hbm %s949_s5, 256 }
 0x19f   : > { %p686_p13 = scmp.ne.s32.totalorder %s898_s22, %s685_s9  ;;  %p690_p2 = scmp.lt.u32.totalorder %s898_s22, %s949_s5 }
 0x1a0   : > { %p691_p3 = scmp.lt.u32.totalorder %s689_s13, %s685_s9  ;;  %p693_p5 = scmp.lt.u32.totalorder %s685_s9, %s898_s22 }
 0x1a1   : > { %p687_p0 = pnand %p686_p13, %p831_p10 }
 0x1a2   : > { %p692_p4 = por %p691_p3, %p690_p2 }
 0x1a3   : > { %p688_p1 = pneg %p687_p0 }
 0x1a4   : > { %p694_p6 = por %p693_p5, %p692_p4 }
 0x1a6   : > { %p695_p7 = pnand %p694_p6, %p688_p1 }
 0x1a8   : > { %698 = shalt.err (!%p695_p7)
}
 0x1a9   : > { %591 = dma.vmem_to_hbm [thread:$0]  (%p831_p10), %s900_s19, 128, %s898_s22, %s382_s26  }
 0x1aa PF: > { %p597_p8 = scmp.ge.s32.totalorder %s745_s25, 2  ;;  %s407_s11 = sand.u32 1, %s733_s23  }
 0x1ab   : > { %s408_s18 = scalar_lea.sflag [#allocation7], %s407_s11 }
 0x1ac   : > { %p594_p9 = pnand %p597_p8, %p835_p11 }
 0x1ae   : > { %728 = dma.done.wait (!%p594_p9), %s408_s18, 128  }
 0x1af   : > { %730 = vsyncadd (!%p594_p9), %s408_s18, 4294967168  ;;  %p21_p12 = scmp.ge.s32.totalorder %s818_s28, 4   ;;  %s952_s23 = smov %s737_s24 }
 0x1b0   : > { %s953_s24 = smov %s741_s0  ;;  %s954_s0 = smov %s829_s6 }
 0x1b1   : > { %s955_s25 = smov %s818_s28  ;;  %23 = sbr.rel (!%p21_p12) target bundleno = 18 (0x12), region = 154 }
 0x1b8   :  { %413 = vsyncpa [#allocation7], 1 }
 0x1b9   :  { %415 = vsyncpa [#allocation7 + $0x1], 1 }
 0x1ba   :  { %416 = vsyncmov [#allocation3] }
 0x1bd   :  { %s417_s25 = vpop.sfrf %416 }
 0x1be   :  { %p554_p10 = scmp.ne.s32.totalorder %s417_s25, 0 }
 0x1c0   :  { %421 = shalt.err (%p554_p10)  }
 0x1c1   :  { %423 = vsyncmov [#allocation3 + $0x1] }
 0x1c4   :  { %s424_s7 = vpop.sfrf %423 }
 0x1c5   :  { %p555_p11 = scmp.ne.s32.totalorder %s424_s7, 0 }
 0x1c7   :  { %428 = shalt.err (%p555_p11)  }
 0x1c8   :  { %430 = vsyncmov [#allocation3 + $0x2] }
 0x1cb   :  { %s431_s8 = vpop.sfrf %430 }
 0x1cc   :  { %p556_p13 = scmp.ne.s32.totalorder %s431_s8, 0 }
 0x1ce   :  { %435 = shalt.err (%p556_p13)  }
 0x1cf   :  { %437 = vsyncmov [#allocation3 + $0x3] }
 0x1d2   :  { %s438_s16 = vpop.sfrf %437 }
 0x1d3   :  { %p557_p0 = scmp.ne.s32.totalorder %s438_s16, 0 }
 0x1d5   :  { %442 = shalt.err (%p557_p0)  }
 0x1d6   :  { %444 = vsyncmov [#allocation3 + $0x4] }
 0x1d9   :  { %s445_s28 = vpop.sfrf %444 }
 0x1da   :  { %p558_p1 = scmp.ne.s32.totalorder %s445_s28, 0 }
 0x1dc   :  { %449 = shalt.err (%p558_p1)  }
 0x1dd   :  { %451 = vsyncmov [#allocation3 + $0x5] }
 0x1e0   :  { %s452_s1 = vpop.sfrf %451 }
 0x1e1   :  { %p559_p2 = scmp.ne.s32.totalorder %s452_s1, 0 }
 0x1e3   :  { %456 = shalt.err (%p559_p2)  }
 0x1e4   :  { %458 = vsyncmov [#allocation3 + $0x6] }
 0x1e7   :  { %s459_s2 = vpop.sfrf %458 }
 0x1e8   :  { %p560_p3 = scmp.ne.s32.totalorder %s459_s2, 0 }
 0x1ea   :  { %463 = shalt.err (%p560_p3)  }
 0x1eb   :  { %465 = vsyncmov [#allocation3 + $0x7] }
 0x1ee   :  { %s466_s3 = vpop.sfrf %465 }
 0x1ef   :  { %p561_p4 = scmp.ne.s32.totalorder %s466_s3, 0 }
 0x1f1   :  { %470 = shalt.err (%p561_p4)  }

</bundles_post_ra>
